<compile_context>
chip_gen: v7x
topology: tpu7x:2x2x1
jax: 0.10.0
libtpu: 0.0.40
codegen_flags: <defaults>
</compile_context>

<pallas_src>
import jax
import jax.numpy as jnp
from jax.experimental import pallas as pl
from jax.experimental.pallas import tpu as pltpu


def _round_up(x, m):
    return ((x + m - 1) // m) * m


def _patch_embed_kernel(p_ref, w_ref, params_ref, o_ref):
    # p_ref:      (K, tm)  bf16 patch columns (one column per output location)
    # w_ref:      (E, K)   bf16 conv weight reshaped
    # params_ref: (E, 3)   f32  [bias | gamma | beta] as columns
    # o_ref:      (E, tm)  f32
    eps = 1e-5

    # Conv-as-matmul on the MXU, f32 accumulation, + bias (lane-broadcast).
    y = jnp.dot(w_ref[...], p_ref[...], preferred_element_type=jnp.float32)
    y = y + params_ref[:, 0:1]

    # LayerNorm over the embedding axis (axis 0 here), biased variance like
    # PyTorch nn.LayerNorm.
    e_inv = 1.0 / y.shape[0]
    mean = jnp.sum(y, axis=0, keepdims=True) * e_inv
    centered = y - mean
    var = jnp.sum(centered * centered, axis=0, keepdims=True) * e_inv
    inv = jax.lax.rsqrt(var + eps)
    o_ref[...] = (centered * inv * params_ref[:, 1:2]
                  + params_ref[:, 2:3]).astype(o_ref.dtype)


def patch_embed_forward(x, weight, bias, gamma, beta, patch_size, *, tm=None):
    """x: (B, C, H, W) float32. weight: (E, C, p, p). Returns (B, E, H', W')."""
    B, C, H, W = x.shape
    E = weight.shape[0]
    p = patch_size
    Hp, Wp = H // p, W // p
    N = B * Hp * Wp
    K = C * p * p

    # --- glue: extract non-overlapping patches (Conv2d stride==kernel) laid
    # out TRANSPOSED as (K, N) so the big N axis is the lane axis inside the
    # kernel.  Cast to bf16 *before* the shuffle to halve its HBM traffic.
    # TODO(synk): fully fuse patch extraction into the kernel (grid over (b,hp)
    # pulling a contiguous (C, p, W) slab) to remove this HBM round-trip.
    xb = x.astype(jnp.bfloat16)
    patches = xb.reshape(B, C, Hp, p, Wp, p).transpose(1, 3, 5, 0, 2, 4)
    patches = patches.reshape(K, N)

    # Conv weight (E, C, p, p) -> (E, K), bf16 for the MXU (no transpose).
    w_mat = weight.reshape(E, K).astype(jnp.bfloat16)

    # Pack the three per-channel vectors as columns -> one tiny resident DMA.
    params = jnp.stack([bias, gamma, beta], axis=1).astype(jnp.float32)  # (E,3)

    # Column tile: multiple of 128 (lane-dense loads/stores), big enough to
    # amortise per-step overhead, capped for small N.
    if tm is None:
        tm = 1024
    tm = max(128, _round_up(tm, 128))
    tm = min(tm, _round_up(N, 128))
    n_pad = _round_up(N, tm)
    if n_pad != N:
        # Zero columns are harmless through bias+LayerNorm and sliced off below.
        patches = jnp.pad(patches, ((0, 0), (0, n_pad - N)))

    grid = (n_pad // tm,)

    cost = pl.CostEstimate(
        flops=2 * n_pad * K * E,
        transcendentals=n_pad,
        bytes_accessed=K * n_pad * 2 + E * K * 2 + E * 3 * 4 + E * n_pad * 4,
    )

    out = pl.pallas_call(
        _patch_embed_kernel,
        out_shape=jax.ShapeDtypeStruct((E, n_pad), jnp.float32),
        grid_spec=pltpu.PrefetchScalarGridSpec(
            num_scalar_prefetch=0,
            grid=grid,
            in_specs=[
                pl.BlockSpec((K, tm), lambda i: (0, i)),   # patch cols (tiled)
                pl.BlockSpec((E, K), lambda i: (0, 0)),    # weight (resident)
                pl.BlockSpec((E, 3), lambda i: (0, 0)),    # bias/gamma/beta
            ],
            out_specs=pl.BlockSpec((E, tm), lambda i: (0, i)),  # lane-dense
        ),
        compiler_params=pltpu.CompilerParams(
            dimension_semantics=("parallel",),
            vmem_limit_bytes=32 * 1024 * 1024,
        ),
        cost_estimate=cost,
    )(patches, w_mat, params)

    out = out[:, :N]
    # (E, B*Hp*Wp) -> (E, B, Hp, Wp) -> (B, E, Hp, Wp): only the two leading
    # (non-lane) axes swap; matches the module's NCHW output contract.
    return out.reshape(E, B, Hp, Wp).transpose(1, 0, 2, 3)


def _reference(x, weight, bias, gamma, beta, patch_size):
    """Pure-JAX f32 reference mirroring the PyTorch forward."""
    y = jax.lax.conv_general_dilated(
        x, weight, window_strides=(patch_size, patch_size), padding="VALID",
        dimension_numbers=("NCHW", "OIHW", "NCHW"),
    ) + bias[None, :, None, None]
    B, C, H, W = y.shape
    t = y.reshape(B, C, H * W).transpose(0, 2, 1)          # (B, HW, C)
    mean = jnp.mean(t, axis=-1, keepdims=True)
    var = jnp.mean((t - mean) ** 2, axis=-1, keepdims=True)
    t = (t - mean) / jnp.sqrt(var + 1e-5) * gamma + beta
    return t.reshape(B, H, W, C).transpose(0, 3, 1, 2)


if __name__ == "__main__":
    key = jax.random.PRNGKey(0)

    # --- test 1: tiny shapes, exercises the N-padding (N=32 -> 128) path.
    B, C_in, H, W = 2, 4, 16, 16
    patch_size = 4
    embed_dim = 32

    k1, k2, k3, k4, k5, k6 = jax.random.split(key, 6)
    x = jax.random.normal(k1, (B, C_in, H, W), dtype=jnp.float32)
    weight = jax.random.normal(k2, (embed_dim, C_in, patch_size, patch_size),
                               dtype=jnp.float32) * 0.05
    bias = jax.random.normal(k3, (embed_dim,), dtype=jnp.float32) * 0.01
    gamma = 1.0 + 0.1 * jax.random.normal(k4, (embed_dim,), dtype=jnp.float32)
    beta = 0.1 * jax.random.normal(k5, (embed_dim,), dtype=jnp.float32)

    ref = _reference(x, weight, bias, gamma, beta, patch_size)
    out = patch_embed_forward(x, weight, bias, gamma, beta, patch_size)
    out = jax.block_until_ready(out)
    assert out.shape == (B, embed_dim, H // patch_size, W // patch_size), out.shape
    # bf16 MXU inputs -> loosened tolerance vs the f32 reference.
    assert jnp.allclose(out, ref, atol=3e-2, rtol=3e-2), float(
        jnp.max(jnp.abs(out - ref)))

    # --- test 2: exercise the multi-step grid (N=256, tm=128 -> grid=(2,)).
    B2, H2, W2 = 4, 32, 32
    x2 = jax.random.normal(k6, (B2, C_in, H2, W2), dtype=jnp.float32)
    ref2 = _reference(x2, weight, bias, gamma, beta, patch_size)
    out2 = patch_embed_forward(x2, weight, bias, gamma, beta, patch_size, tm=128)
    out2 = jax.block_until_ready(out2)
    assert out2.shape == (B2, embed_dim, H2 // patch_size, W2 // patch_size)
    assert jnp.allclose(out2, ref2, atol=3e-2, rtol=3e-2), float(
        jnp.max(jnp.abs(out2 - ref2)))

    print("KERNEL_OK")
</pallas_src>

<mosaic_0001>
module attributes {stable_mosaic.version = 11 : i64} {
  func.func @_patch_embed_kernel(%arg0: i32, %arg1: memref<64x128xbf16, #tpu.memory_space<vmem>>, %arg2: memref<32x64xbf16, #tpu.memory_space<vmem>>, %arg3: memref<32x3xf32, #tpu.memory_space<vmem>>, %arg4: memref<32x128xf32, #tpu.memory_space<vmem>>) attributes {dimension_semantics = [#tpu.dimension_semantics<parallel>], iteration_bounds = array<i64: 1>, scalar_prefetch = 0 : i64, scratch_operands = 0 : i64, tpu.core_type = #tpu.core_type<tc>, window_params = [{transform_indices = @transform_0, window_bounds = array<i64: 64, 128>}, {pipeline_mode = #tpu.pipeline_mode<synchronous>, transform_indices = @transform_1, window_bounds = array<i64: 32, 64>}, {pipeline_mode = #tpu.pipeline_mode<synchronous>, transform_indices = @transform_2, window_bounds = array<i64: 32, 3>}, {transform_indices = @transform_3, window_bounds = array<i64: 32, 128>}]} {
    %c0 = arith.constant 0 : index
    %c0_0 = arith.constant 0 : index
    %0 = vector.load %arg2[%c0, %c0_0] : memref<32x64xbf16, #tpu.memory_space<vmem>>, vector<32x64xbf16>
    %c0_1 = arith.constant 0 : index
    %c0_2 = arith.constant 0 : index
    %1 = vector.load %arg1[%c0_1, %c0_2] : memref<64x128xbf16, #tpu.memory_space<vmem>>, vector<64x128xbf16>
    %cst = arith.constant dense<0.000000e+00> : vector<32x128xf32>
    %2 = tpu.matmul %0, %1, %cst {dimension_numbers = #tpu.dot_dimension_numbers<[1], [0], [0], [1], [0, 0, 1, 1], [], []>} : vector<32x64xbf16>, vector<64x128xbf16>, vector<32x128xf32> -> vector<32x128xf32>
    %c0_3 = arith.constant 0 : index
    %c0_4 = arith.constant 0 : index
    %3 = vector.load %arg3[%c0_3, %c0_4] : memref<32x3xf32, #tpu.memory_space<vmem>>, vector<32x1xf32>
    %4 = vector.broadcast %3 : vector<32x1xf32> to vector<32x128xf32>
    %5 = arith.addf %2, %4 : vector<32x128xf32>
    %cst_5 = arith.constant dense<0.000000e+00> : vector<128xf32>
    %6 = vector.multi_reduction <add>, %5, %cst_5 [0] : vector<32x128xf32> to vector<128xf32>
    %7 = vector.shape_cast %6 : vector<128xf32> to vector<1x128xf32>
    %cst_6 = arith.constant 3.125000e-02 : f32
    %8 = vector.broadcast %cst_6 : f32 to vector<1x128xf32>
    %9 = arith.mulf %7, %8 : vector<1x128xf32>
    %10 = vector.broadcast %9 : vector<1x128xf32> to vector<32x128xf32>
    %11 = arith.subf %5, %10 : vector<32x128xf32>
    %12 = arith.mulf %11, %11 : vector<32x128xf32>
    %cst_7 = arith.constant dense<0.000000e+00> : vector<128xf32>
    %13 = vector.multi_reduction <add>, %12, %cst_7 [0] : vector<32x128xf32> to vector<128xf32>
    %14 = vector.shape_cast %13 : vector<128xf32> to vector<1x128xf32>
    %cst_8 = arith.constant 3.125000e-02 : f32
    %15 = vector.broadcast %cst_8 : f32 to vector<1x128xf32>
    %16 = arith.mulf %14, %15 : vector<1x128xf32>
    %cst_9 = arith.constant 9.99999974E-6 : f32
    %17 = vector.broadcast %cst_9 : f32 to vector<1x128xf32>
    %18 = arith.addf %16, %17 : vector<1x128xf32>
    %19 = math.rsqrt %18 : vector<1x128xf32>
    %20 = vector.broadcast %19 : vector<1x128xf32> to vector<32x128xf32>
    %21 = arith.mulf %11, %20 : vector<32x128xf32>
    %c0_10 = arith.constant 0 : index
    %c1 = arith.constant 1 : index
    %22 = vector.load %arg3[%c0_10, %c1] : memref<32x3xf32, #tpu.memory_space<vmem>>, vector<32x1xf32>
    %23 = vector.broadcast %22 : vector<32x1xf32> to vector<32x128xf32>
    %24 = arith.mulf %21, %23 : vector<32x128xf32>
    %c0_11 = arith.constant 0 : index
    %c2 = arith.constant 2 : index
    %25 = vector.load %arg3[%c0_11, %c2] : memref<32x3xf32, #tpu.memory_space<vmem>>, vector<32x1xf32>
    %26 = vector.broadcast %25 : vector<32x1xf32> to vector<32x128xf32>
    %27 = arith.addf %24, %26 : vector<32x128xf32>
    %c0_12 = arith.constant 0 : index
    %c0_13 = arith.constant 0 : index
    %28 = vector.load %arg4[%c0_12, %c0_13] : memref<32x128xf32, #tpu.memory_space<vmem>>, vector<32x128xf32>
    tpu.vector_store %arg4[%c0_12, %c0_13], %27 {strides = array<i32>} : memref<32x128xf32, #tpu.memory_space<vmem>>, vector<32x128xf32>,
    return
  }
  func.func @transform_0(%arg0: i32) -> (i32, i32) {
    %c0_i32 = arith.constant 0 : i32
    %c0_i32_0 = arith.constant 0 : i32
    return %c0_i32, %arg0 : i32, i32
  }
  func.func @transform_1(%arg0: i32) -> (i32, i32) {
    %c0_i32 = arith.constant 0 : i32
    %c0_i32_0 = arith.constant 0 : i32
    %c0_i32_1 = arith.constant 0 : i32
    return %c0_i32, %c0_i32_0 : i32, i32
  }
  func.func @transform_2(%arg0: i32) -> (i32, i32) {
    %c0_i32 = arith.constant 0 : i32
    %c0_i32_0 = arith.constant 0 : i32
    %c0_i32_1 = arith.constant 0 : i32
    return %c0_i32, %c0_i32_0 : i32, i32
  }
  func.func @transform_3(%arg0: i32) -> (i32, i32) {
    %c0_i32 = arith.constant 0 : i32
    %c0_i32_0 = arith.constant 0 : i32
    return %c0_i32, %arg0 : i32, i32
  }
}

</mosaic_0001>

<bundles_post_ra>
// kernel: tpu_custom_call.1
= control target key start
LH: loop header
LB: loop body
LE: loop exit
PB: predicated region body
PF: predicated region fallthrough
CT: control target
= control target key end

     0   :  { %8 = vsyncpa [#allocation3], 0  ;;  %s427_s0 = inlined_call_operand.vmem [shape: bf16[64,128], index: 0, kind: input, shape index: {}]   ;;  %s428_s1 = inlined_call_operand.hbm [shape: bf16[32,64], index: 1, kind: input, shape index: {}]   ;;  %s429_s2 = inlined_call_operand.vmem [shape: f32[32,3], index: 2, kind: input, shape index: {}]   ;;  %s430_s3 = inlined_call_operand.hbm [shape: f32[32,128], index: 3, kind: output, shape index: {}]  }
   0x1   :  { %9 = vsyncpa [#allocation4], 0  ;;  %s348_s12 = smov [#allocation2]   ;;  %s300_s16 = scalar_lea.hbm %s428_s1, 256 }
   0x2   :  { %s17_s13 = sshll.u32 %s348_s12, 4  ;;  %p301_p0 = scmp.ne.s32.totalorder %s428_s1, %s300_s16  ;;  %s18_s13 = int_to_ptr.vmem [resolvable:$true] %s17_s13 }
   0x3   :  { %p304_p1 = scmp.lt.u32.totalorder %s300_s16, %s428_s1 }
   0x5   :  { %p306_p2 = pnand %p304_p1, %p301_p0 }
   0x7   :  { %309 = shalt.err (!%p306_p2)
}
   0x8   :  { %s310_s21 = scalar_lea.vmem %s18_s13, 256  ;;  %p315_p4 = scmp.lt.s32.totalorder %s18_s13, %s18_s13 }
   0x9   :  { %p311_p3 = scmp.ne.s32.totalorder %s18_s13, %s310_s21  ;;  %p316_p5 = scmp.lt.s32.totalorder %s310_s21, %s310_s21 }
   0xb   :  { %p317_p6 = por %p316_p5, %p315_p4 }
   0xd   :  { %p318_p7 = pnand %p317_p6, %p311_p3 }
   0xf   :  { %321 = shalt.err (!%p318_p7)
}
  0x10   :  { %s349_s22 = smov 64   ;;  %s350_s23 = smov 4  }
  0x11   :  { %23 = dma.hbm_to_vmem [thread:$0]  %s428_s1, 256, %s18_s13, [#allocation3], %s349_s22, %s349_s22, %s350_s23  }
  0x12   :  { %344 = dma.done.wait [#allocation3], 256  }
  0x13   :  { %345 = vsyncadd [#allocation3], 4294967040  ;;  %v351_v0 = vmov 0   ;;  %v292_v1 = vld [vmem:[%s427_s0] sm:$0xff]   ;;  %v293_v2 = vld [vmem:[%s427_s0 + $0x8] sm:$0xff]   ;;  %vm100_vm0 = vcmask 523264  }
  0x14   :  { %286 = vset.pattern.permute.xlu0 %v351_v0  ;;  %287 = vset.pattern.permute.xlu1 %v351_v0  ;;  %v294_v3 = vld [vmem:[%s427_s0 + $0x10] sm:$0xff]   ;;  %v296_v4 = vld [vmem:[#allocation2] sm:$0xff]   ;;  %v295_v7 = vld [vmem:[%s427_s0 + $0x18] sm:$0xff]   ;;  %v352_v11 = vmov 1   ;;  %v353_v12 = vmov 2   ;;  %s354_s0 = smov [#allocation5]  }
  0x15   :  { %265 = vmatprep.subr.bf16.mxu0 %v292_v1  ;;  %273 = vmatprep.mubr.msk.bf16.mxu0 %vm100_vm0, %v296_v4  ;;  %v42_v5 = vld [vmem:[%s429_s2] sm:$0xff]  ;;  %v44_v6 = vld [vmem:[%s429_s2 + $0x10] sm:$0xff]  ;;  %v43_v8 = vld [vmem:[%s429_s2 + $0x8] sm:$0xff] }
  0x16   :  { %266 = vmatpush3.bf16.msra.mxu0 %v292_v1  ;;  %48 = vperm.xlu0 %286, %v42_v5   ;;  %v45_v9 = vld [vmem:[%s429_s2 + $0x18] sm:$0xff]  ;;  %v297_v10 = vld [vmem:[#allocation2 + $0x8] sm:$0xff]   ;;  %s239_s2 = sshll.u32 %s354_s0, 4  ;;  %s240_s2 = int_to_ptr.vmem [resolvable:$true] %s239_s2 }
  0x17   :  { %267 = vmatprep.subr.bf16.mxu0 %v293_v2  ;;  %58 = vperm.xlu1 %287, %v44_v6   ;;  %s322_s14 = scalar_lea.vmem %s240_s2, 512  ;;  %p327_p9 = scmp.lt.s32.totalorder %s240_s2, %s240_s2 }
  0x18   :  { %p323_p8 = scmp.ne.s32.totalorder %s240_s2, %s322_s14  ;;  %p328_p10 = scmp.lt.s32.totalorder %s322_s14, %s322_s14 }
  0x1a   :  { %268 = vmatpush3.bf16.msra.mxu0 %v293_v2  ;;  %53 = vperm.xlu0 %286, %v43_v8   ;;  %p329_p11 = por %p328_p10, %p327_p9 }
  0x1b   :  { %269 = vmatprep.subr.bf16.mxu0 %v294_v3  ;;  %63 = vperm.xlu1 %287, %v45_v9  }
  0x1c   :  { %p330_p12 = pnand %p329_p11, %p323_p8 }
  0x1e   :  { %270 = vmatpush3.bf16.msra.mxu0 %v294_v3  ;;  %288 = vset.pattern.permute.xlu0 %v352_v11 }
  0x1f   :  { %271 = vmatprep.subr.bf16.mxu0 %v295_v7  ;;  %289 = vset.pattern.permute.xlu1 %v352_v11 }
  0x20   :  { %191 = vperm.xlu0 %288, %v42_v5   ;;  %195 = vperm.xlu1 %289, %v43_v8  }
  0x22   :  { %272 = vmatpush3.bf16.msra.mxu0 %v295_v7 }
  0x24   :  { %203 = vperm.xlu0 %288, %v45_v9   ;;  %199 = vperm.xlu1 %289, %v44_v6  }
  0x25   :  { %274 = vmatmul.mubr.msk.bf16.vlgmr.msra.gmra.mrb[0].mxu0 %vm100_vm0, %v297_v10 }
  0x28   :  { %291 = vset.pattern.permute.xlu0 %v353_v12  ;;  %290 = vset.pattern.permute.xlu1 %v353_v12 }
  0x29   :  { %215 = vperm.xlu0 %291, %v43_v8   ;;  %211 = vperm.xlu1 %290, %v42_v5  }
  0x2d   :  { %219 = vperm.xlu1 %290, %v44_v6  }
  0x31   :  { %223 = vperm.xlu1 %290, %v45_v9  }
  0x95   :  { %v49_v13 = vpop.permute.xlu0 %48 }
  0x96   :  { %v59_v14 = vpop.permute.xlu1 %58 }
  0x99   :  { %v54_v18 = vpop.permute.xlu0 %53 }
  0x9a   :  { %v64_v22 = vpop.permute.xlu1 %63 }
  0x9f   :  { %v196_v50 = vpop.permute.xlu1 %195  ;;  %v192_v57 = vpop.permute.xlu0 %191 }
  0xa3   :  { %v200_v54 = vpop.permute.xlu1 %199  ;;  %v204_v59 = vpop.permute.xlu0 %203 }
  0xa8   :  { %v212_v56 = vpop.permute.xlu1 %211  ;;  %v216_v1 = vpop.permute.xlu0 %215 }
  0xac   :  { %v220_v58 = vpop.permute.xlu1 %219 }
  0xb0   :  { %v224_v6 = vpop.permute.xlu1 %223 }
  0xf8   :  { %v275_v15 = vpop.f32.mrb[0].mxu0 }
  0xf9   :  { %v141_v16 = vpop.f32.mrb[1].mxu0  ;;  %v150_v23 = vadd.f32 %v275_v15, %v59_v14 }
  0xfa   :  { %v276_v17 = vpop.f32.mrb[2].mxu0  ;;  %v142_v20 = vadd.f32 %v141_v16, %v49_v13 }
  0xfb   :  { %v144_v19 = vpop.f32.mrb[3].mxu0  ;;  %v153_v25 = vadd.f32 %v276_v17, %v64_v22 }
  0xfc   :  { %v145_v21 = vadd.f32 %v144_v19, %v54_v18 }
  0xfe   :  { %v156_v24 = vadd.f32 %v145_v21, %v142_v20 }
 0x100   :  { %v157_v26 = vadd.f32 %v156_v24, %v150_v23 }
 0x102   :  { %v158_v27 = vadd.f32 %v157_v26, %v153_v25 }
 0x104   :  { %v159_v28 = vrot.slane %v158_v27, 4 }
 0x106   :  { %v160_v29 = vadd.f32 %v159_v28, %v158_v27 }
 0x108   :  { %v161_v30 = vrot.slane %v160_v29, 2 }
 0x10a   :  { %v162_v31 = vadd.f32 %v161_v30, %v160_v29 }
 0x10c   :  { %v163_v32 = vrot.slane %v162_v31, 1 }
 0x10e   :  { %v164_v33 = vadd.f32 %v163_v32, %v162_v31 }
 0x110   :  { %v165_v34 = vmul.f32 0.03125, %v164_v33 }
 0x112   :  { %v166_v35 = vsub.f32 %v142_v20, %v165_v34  ;;  %v167_v36 = vsub.f32 %v145_v21, %v165_v34  ;;  %v168_v37 = vsub.f32 %v150_v23, %v165_v34  ;;  %v169_v38 = vsub.f32 %v153_v25, %v165_v34 }
 0x114   :  { %v170_v39 = vmul.f32 %v166_v35, %v166_v35  ;;  %v171_v40 = vmul.f32 %v167_v36, %v167_v36  ;;  %v172_v41 = vmul.f32 %v168_v37, %v168_v37  ;;  %v173_v43 = vmul.f32 %v169_v38, %v169_v38 }
 0x116   :  { %v174_v42 = vadd.f32 %v171_v40, %v170_v39 }
 0x118   :  { %v175_v44 = vadd.f32 %v174_v42, %v172_v41 }
 0x11a   :  { %v176_v45 = vadd.f32 %v175_v44, %v173_v43 }
 0x11c   :  { %v177_v46 = vrot.slane %v176_v45, 4 }
 0x11e   :  { %v178_v47 = vadd.f32 %v177_v46, %v176_v45 }
 0x120   :  { %v179_v48 = vrot.slane %v178_v47, 2 }
 0x122   :  { %v180_v49 = vadd.f32 %v179_v48, %v178_v47 }
 0x124   :  { %v181_v51 = vrot.slane %v180_v49, 1 }
 0x126   :  { %v182_v52 = vadd.f32 %v181_v51, %v180_v49 }
 0x128   :  { %v183_v53 = vmul.f32 0.03125, %v182_v52 }
 0x12a   :  { %v184_v55 = vadd.f32 1e-05, %v183_v53 }
 0x12c   :  { %298 = vrsqrt.f32 %v184_v55 }
 0x136   :  { %v299_v60 = vpop.eup %298 }
 0x137   :  { %v187_v61 = vmul.f32 %v299_v60, %v167_v36  ;;  %v188_v62 = vmul.f32 %v299_v60, %v168_v37  ;;  %v186_v63 = vmul.f32 %v299_v60, %v166_v35  ;;  %v189_v0 = vmul.f32 %v299_v60, %v169_v38 }
 0x139   :  { %v207_v2 = vmul.f32 %v196_v50, %v187_v61  ;;  %v208_v3 = vmul.f32 %v200_v54, %v188_v62  ;;  %v206_v4 = vmul.f32 %v192_v57, %v186_v63  ;;  %v209_v5 = vmul.f32 %v204_v59, %v189_v0 }
 0x13b   :  { %v226_v7 = vadd.f32 %v212_v56, %v206_v4  ;;  %v228_v8 = vadd.f32 %v220_v58, %v208_v3  ;;  %v229_v9 = vadd.f32 %v224_v6, %v209_v5  ;;  %v227_v10 = vadd.f32 %v216_v1, %v207_v2 }
 0x13d   :  { %230 = vst [vmem:[#allocation5] sm:$0xff] %v226_v7  ;;  %232 = vst [vmem:[#allocation5 + $0x10] sm:$0xff] %v228_v8 }
 0x13e   :  { %233 = vst [vmem:[#allocation5 + $0x18] sm:$0xff] %v229_v9  ;;  %231 = vst [vmem:[#allocation5 + $0x8] sm:$0xff] %v227_v10 }
 0x13f   :  { %333 = shalt.err (!%p330_p12)
}
 0x140   :  { %s334_s17 = scalar_lea.hbm %s430_s3, 512 }
 0x141   :  { %p335_p13 = scmp.ne.s32.totalorder %s430_s3, %s334_s17  ;;  %p338_p0 = scmp.lt.u32.totalorder %s334_s17, %s430_s3 }
 0x143   :  { %p340_p1 = pnand %p338_p0, %p335_p13 }
 0x145   :  { %343 = shalt.err (!%p340_p1)
}
 0x146   :  { %s355_s22 = smov 128   ;;  %s356_s23 = smov 8  }
 0x147   :  { %245 = dma.vmem_to_hbm [thread:$0]  %s240_s2, 512, %s430_s3, [#allocation4], %s355_s22, %s355_s22, %s356_s23  }
 0x148   :  { %346 = dma.done.wait [#allocation4], 512  }
 0x149   :  { %347 = vsyncadd [#allocation4], 4294966784 }
 0x14a   :  { %249 = vsyncpa [#allocation3], 1 }
 0x14b   :  { %250 = vsyncpa [#allocation4], 1 }

</bundles_post_ra>
